<compile_context>
chip_gen: v6e
topology: v6e:2x2x1
jax: 0.10.0
libtpu: 0.0.40
codegen_flags: <defaults>
</compile_context>

<pallas_src>
import math
import functools

import jax
import jax.numpy as jnp
from jax.experimental import pallas as pl
from jax.experimental.pallas import tpu as pltpu


def _conv1x1_sigmoid_kernel(x_ref, w_ref, b_ref, o_ref):
    # x_ref: (1, C_in, T)   w_ref: (C_out, C_in)   b_ref: (C_out, 1)
    # o_ref: (1, C_out, T)
    x = x_ref[0].astype(jnp.float32)            # (C_in, T)  lanes = spatial
    w = w_ref[...]                              # (C_out, C_in) f32
    c_in = x.shape[0]

    # VPU broadcast-FMA over the tiny channel contraction (avoids MXU
    # fill/drain for a <1%-utilisation matmul).  Accumulate in f32.
    acc = b_ref[...] + w[:, 0:1] * x[0:1, :]    # (C_out, T)
    for c in range(1, c_in):
        acc = acc + w[:, c:c + 1] * x[c:c + 1, :]

    # Fused sigmoid.
    o_ref[0] = (1.0 / (1.0 + jnp.exp(-acc))).astype(o_ref.dtype)


@functools.partial(jax.jit, static_argnames=("tile_hw",))
def heatmap_net_forward(x_nchw, weight, bias, tile_hw=8192):
    """Pallas implementation of HeatmapNet.forward.

    Args:
      x_nchw: (B, C_in, H, W) input (PyTorch NCHW convention).
      weight: (C_out, C_in) 1x1-conv weight (spatial dims squeezed).
      bias:   (C_out,) conv bias.
      tile_hw: spatial tile (multiple of 128); full H*W is used if smaller.

    Returns:
      (B, C_out, H, W) array: sigmoid(conv1x1(x)).
    """
    assert tile_hw % 128 == 0, "tile_hw must be a multiple of 128"
    B, C_in, H, W = x_nchw.shape
    C_out = weight.shape[0]
    HW = H * W

    # Free reshape -- channel-major layout kept end to end (no transposes).
    x = x_nchw.reshape(B, C_in, HW)
    w = weight.astype(jnp.float32)                    # (C_out, C_in)
    b = bias.reshape(C_out, 1).astype(jnp.float32)    # (C_out, 1)

    # Lane-dense spatial tile: full extent when small, else a 128-multiple
    # tile; Pallas masks the uneven tail block on write.
    t = HW if HW <= tile_hw else tile_hw
    grid = (B, pl.cdiv(HW, t))

    y = pl.pallas_call(
        _conv1x1_sigmoid_kernel,
        out_shape=jax.ShapeDtypeStruct((B, C_out, HW), x_nchw.dtype),
        grid_spec=pltpu.PrefetchScalarGridSpec(
            num_scalar_prefetch=0,
            grid=grid,
            in_specs=[
                pl.BlockSpec((1, C_in, t), lambda bi, si: (bi, 0, si)),
                pl.BlockSpec((C_out, C_in), lambda bi, si: (0, 0)),   # grid-invariant
                pl.BlockSpec((C_out, 1), lambda bi, si: (0, 0)),      # grid-invariant
            ],
            out_specs=pl.BlockSpec((1, C_out, t), lambda bi, si: (bi, 0, si)),
        ),
        compiler_params=pltpu.CompilerParams(
            dimension_semantics=("parallel", "parallel")),
    )(x, w, b)

    return y.reshape(B, C_out, H, W)


def init_params(key, in_channels, out_channels=1):
    """Deterministic init mirroring nn.Conv2d defaults (kaiming-uniform-ish)."""
    k_w, k_b = jax.random.split(key)
    fan_in = in_channels * 1 * 1
    bound_w = math.sqrt(1.0 / fan_in) * math.sqrt(3.0)  # kaiming_uniform a=sqrt(5)
    bound_b = 1.0 / math.sqrt(fan_in)
    weight = jax.random.uniform(
        k_w, (out_channels, in_channels), jnp.float32, -bound_w, bound_w)
    bias = jax.random.uniform(
        k_b, (out_channels,), jnp.float32, -bound_b, bound_b)
    return weight, bias


def _reference(x, weight, bias):
    y = jnp.einsum("bchw,oc->bohw", x, weight) + bias[None, :, None, None]
    return jax.nn.sigmoid(y)


if __name__ == "__main__":
    key = jax.random.PRNGKey(0)
    k_x, k_p = jax.random.split(key)

    # Small shapes consistent with the module: B=2, C_in=4, 16x16 spatial.
    B, C_in, H, W = 2, 4, 16, 16
    x = jax.random.normal(k_x, (B, C_in, H, W), jnp.float32)
    weight, bias = init_params(k_p, C_in, out_channels=1)

    out = jax.block_until_ready(heatmap_net_forward(x, weight, bias))
    ref = _reference(x, weight, bias)
    assert out.shape == (B, 1, H, W), out.shape
    assert jnp.allclose(out, ref, atol=1e-5, rtol=1e-5), "mismatch vs reference"

    # Second check: non-multiple-of-128 H*W, >1 output channel, tiled spatial
    # axis with an uneven tail block (exercises the masked remainder path).
    B2, C2, H2, W2, O2 = 1, 6, 10, 13, 3
    x2 = jax.random.normal(jax.random.PRNGKey(1), (B2, C2, H2, W2), jnp.float32)
    w2, b2 = init_params(jax.random.PRNGKey(2), C2, out_channels=O2)
    out2 = jax.block_until_ready(heatmap_net_forward(x2, w2, b2, tile_hw=128))
    ref2 = _reference(x2, w2, b2)
    assert out2.shape == (B2, O2, H2, W2), out2.shape
    assert jnp.allclose(out2, ref2, atol=1e-5, rtol=1e-5), "mismatch (tiled case)"

    print("KERNEL_OK")
</pallas_src>

<mosaic_0001>
module attributes {stable_mosaic.version = 11 : i64} {
  func.func @_conv1x1_sigmoid_kernel(%arg0: i32, %arg1: i32, %arg2: memref<1x4x256xf32, #tpu.memory_space<vmem>>, %arg3: memref<1x4xf32, #tpu.memory_space<vmem>>, %arg4: memref<1x1xf32, #tpu.memory_space<vmem>>, %arg5: memref<1x1x256xf32, #tpu.memory_space<vmem>>) attributes {dimension_semantics = [#tpu.dimension_semantics<parallel>, #tpu.dimension_semantics<parallel>], iteration_bounds = array<i64: 2, 1>, scalar_prefetch = 0 : i64, scratch_operands = 0 : i64, tpu.core_type = #tpu.core_type<tc>, window_params = [{transform_indices = @transform_0, window_bounds = array<i64: 1, 4, 256>}, {pipeline_mode = #tpu.pipeline_mode<synchronous>, transform_indices = @transform_1, window_bounds = array<i64: 1, 4>}, {pipeline_mode = #tpu.pipeline_mode<synchronous>, transform_indices = @transform_2, window_bounds = array<i64: 1, 1>}, {transform_indices = @transform_3, window_bounds = array<i64: 1, 1, 256>}]} {
    %c0 = arith.constant 0 : index
    %c0_0 = arith.constant 0 : index
    %c0_1 = arith.constant 0 : index
    %0 = vector.load %arg2[%c0, %c0_0, %c0_1] : memref<1x4x256xf32, #tpu.memory_space<vmem>>, vector<1x4x256xf32>
    %1 = vector.shape_cast %0 : vector<1x4x256xf32> to vector<4x256xf32>
    %c0_2 = arith.constant 0 : index
    %c0_3 = arith.constant 0 : index
    %2 = vector.load %arg3[%c0_2, %c0_3] : memref<1x4xf32, #tpu.memory_space<vmem>>, vector<1x4xf32>
    %c0_4 = arith.constant 0 : index
    %c0_5 = arith.constant 0 : index
    %3 = vector.load %arg4[%c0_4, %c0_5] : memref<1x1xf32, #tpu.memory_space<vmem>>, vector<1x1xf32>
    %4 = vector.extract_strided_slice %2 {offsets = [0, 0], sizes = [1, 1], strides = [1, 1]} : vector<1x4xf32> to vector<1x1xf32>
    %5 = vector.extract_strided_slice %1 {offsets = [0, 0], sizes = [1, 256], strides = [1, 1]} : vector<4x256xf32> to vector<1x256xf32>
    %6 = vector.broadcast %4 : vector<1x1xf32> to vector<1x256xf32>
    %7 = arith.mulf %6, %5 : vector<1x256xf32>
    %8 = vector.broadcast %3 : vector<1x1xf32> to vector<1x256xf32>
    %9 = arith.addf %8, %7 : vector<1x256xf32>
    %10 = vector.extract_strided_slice %2 {offsets = [0, 1], sizes = [1, 1], strides = [1, 1]} : vector<1x4xf32> to vector<1x1xf32>
    %11 = vector.extract_strided_slice %1 {offsets = [1, 0], sizes = [1, 256], strides = [1, 1]} : vector<4x256xf32> to vector<1x256xf32>
    %12 = vector.broadcast %10 : vector<1x1xf32> to vector<1x256xf32>
    %13 = arith.mulf %12, %11 : vector<1x256xf32>
    %14 = arith.addf %9, %13 : vector<1x256xf32>
    %15 = vector.extract_strided_slice %2 {offsets = [0, 2], sizes = [1, 1], strides = [1, 1]} : vector<1x4xf32> to vector<1x1xf32>
    %16 = vector.extract_strided_slice %1 {offsets = [2, 0], sizes = [1, 256], strides = [1, 1]} : vector<4x256xf32> to vector<1x256xf32>
    %17 = vector.broadcast %15 : vector<1x1xf32> to vector<1x256xf32>
    %18 = arith.mulf %17, %16 : vector<1x256xf32>
    %19 = arith.addf %14, %18 : vector<1x256xf32>
    %20 = vector.extract_strided_slice %2 {offsets = [0, 3], sizes = [1, 1], strides = [1, 1]} : vector<1x4xf32> to vector<1x1xf32>
    %21 = vector.extract_strided_slice %1 {offsets = [3, 0], sizes = [1, 256], strides = [1, 1]} : vector<4x256xf32> to vector<1x256xf32>
    %22 = vector.broadcast %20 : vector<1x1xf32> to vector<1x256xf32>
    %23 = arith.mulf %22, %21 : vector<1x256xf32>
    %24 = arith.addf %19, %23 : vector<1x256xf32>
    %cst = arith.constant 0.000000e+00 : f32
    %25 = vector.broadcast %cst : f32 to vector<1x256xf32>
    %26 = arith.subf %25, %24 : vector<1x256xf32>
    %27 = math.exp %26 : vector<1x256xf32>
    %cst_6 = arith.constant 1.000000e+00 : f32
    %28 = vector.broadcast %cst_6 : f32 to vector<1x256xf32>
    %29 = arith.addf %28, %27 : vector<1x256xf32>
    %cst_7 = arith.constant 1.000000e+00 : f32
    %30 = vector.broadcast %cst_7 : f32 to vector<1x256xf32>
    %31 = arith.divf %30, %29 : vector<1x256xf32>
    %c0_8 = arith.constant 0 : index
    %c0_9 = arith.constant 0 : index
    %c0_10 = arith.constant 0 : index
    %32 = vector.load %arg5[%c0_8, %c0_9, %c0_10] : memref<1x1x256xf32, #tpu.memory_space<vmem>>, vector<1x1x256xf32>
    %33 = vector.shape_cast %32 : vector<1x1x256xf32> to vector<1x256xf32>
    %34 = vector.shape_cast %31 : vector<1x256xf32> to vector<1x1x256xf32>
    tpu.vector_store %arg5[%c0_8, %c0_9, %c0_10], %34 {strides = array<i32>} : memref<1x1x256xf32, #tpu.memory_space<vmem>>, vector<1x1x256xf32>,
    return
  }
  func.func @transform_0(%arg0: i32, %arg1: i32) -> (i32, i32, i32) {
    %c0_i32 = arith.constant 0 : i32
    %c0_i32_0 = arith.constant 0 : i32
    return %arg0, %c0_i32, %arg1 : i32, i32, i32
  }
  func.func @transform_1(%arg0: i32, %arg1: i32) -> (i32, i32) {
    %c0_i32 = arith.constant 0 : i32
    %c0_i32_0 = arith.constant 0 : i32
    %c0_i32_1 = arith.constant 0 : i32
    return %c0_i32, %c0_i32_0 : i32, i32
  }
  func.func @transform_2(%arg0: i32, %arg1: i32) -> (i32, i32) {
    %c0_i32 = arith.constant 0 : i32
    %c0_i32_0 = arith.constant 0 : i32
    %c0_i32_1 = arith.constant 0 : i32
    return %c0_i32, %c0_i32_0 : i32, i32
  }
  func.func @transform_3(%arg0: i32, %arg1: i32) -> (i32, i32, i32) {
    %c0_i32 = arith.constant 0 : i32
    %c0_i32_0 = arith.constant 0 : i32
    return %arg0, %c0_i32, %arg1 : i32, i32, i32
  }
}

</mosaic_0001>

<bundles_post_ra>
// kernel: heatmap_net_forward.1
= control target key start
LH: loop header
LB: loop body
LE: loop exit
PB: predicated region body
PF: predicated region fallthrough
CT: control target
= control target key end

     0   :  { %s488_s14 = smov 0   ;;  %s490_s15 = smov 0   ;;  %s528_s0 = inlined_call_operand.vmem [shape: f32[2,4,256], index: 0, kind: input, shape index: {}]   ;;  %s529_s1 = inlined_call_operand.vmem [shape: f32[1,4], index: 1, kind: input, shape index: {}]   ;;  %s530_s2 = inlined_call_operand.<no memory space> [shape: f32[1,1], index: 2, kind: input, shape index: {}]   ;;  %s531_s3 = inlined_call_operand.vmem [shape: f32[2,1,256], index: 3, kind: output, shape index: {}]  }
   0x1   :  { %v8_v0 = vstv %s530_s2  ;;  %s492_s16 = smov 0  }
   0x2   :  { %9 = vst [vmem:[#allocation2] sm:$0x1] %v8_v0 }
   0x3 LB: > { %s27_s2 = sadd.s32 1, %s454_s15  ;;  %p387_p0 = scmp.ge.s32.totalorder %s458_s16, 1  ;;  %s458_s16 = sphi %s492_s16, %s15_s16   ;;  %s454_s15 = sphi %s490_s15, %s533_s15   ;;  %s450_s14 = sphi %s488_s14, %s532_s14  }
   0x4   : > { %p29_p1 = scmp.ge.s32.totalorder %s27_s2, 2  ;;  %p160_p2 = scmp.lt.s32.totalorder %s458_s16, 3 }
   0x6   : > { %s535_s2 = smov (%p29_p1, %s27_s2), 0  ;;  %p161_p3 = pnand %p387_p0, %p160_p2 }
   0x7   : > { %p192_p4 = scmp.lt.s32.totalorder (!%p161_p3), %s450_s14, 1 }
   0x8   : > { %164 = sbr.rel (%p161_p3) target bundleno = 196 (0xc4), region = 32 }
   0xd   : > { %v212_v1 = vld [vmem:[#allocation2] sm:$0x1]  ;;  %v460_v3 = vmov 0   ;;  %v461_v4 = vmov 2   ;;  %v462_v5 = vmov 1   ;;  %v463_v6 = vmov 3  }
   0xe   : > { %v211_v2 = vld [vmem:[%s529_s1] sm:$0x1]  ;;  %428 = vset.pattern.permute.xlu1 %v460_v3  ;;  %426 = vset.pattern.permute.xlu0 %v460_v3  ;;  %v218_v7 = vlaneseq  ;;  %s537_s14 = smov (!%p192_p4, %s450_s14), 1  ;;  %v464_v36 = vmov 1966171168  }
   0xf   : > { %225 = vperm.xlu1 %428, %v212_v1   ;;  %215 = vperm.xlu0 %426, %v211_v2   ;;  %s396_s19 = sshll.u32 %s537_s14, 3  ;;  %v283_v37 = vunpack.c.l.s4 %v464_v36  ;;  %s390_s23 = sshll.u32 %s537_s14, 1 }
  0x10   : > { %v219_v8 = vshrl.u32 %v218_v7, 7  ;;  %s199_s22 = scalar_lea.vmem %s528_s0, %s396_s19  ;;  %vm299_vm0 = vcmp.lt.s32.totalorder %v218_v7, 256  ;;  %s208_s26 = scalar_lea.vmem %s531_s3, %s390_s23 }
  0x11   : > { %v210_v13 = vld [vmem:[%s199_s22] sm:$0xff]  ;;  %v284_v38 = vunpack.c.0.s8 %v283_v37 }
  0x12   : > { %v220_v9 = vsub.s32 0, %v219_v8 }
  0x13   : > { %429 = vset.pattern.permute.xlu1 %v461_v4  ;;  %427 = vset.pattern.permute.xlu0 %v462_v5  ;;  %v287_v39 = vsub.s32 %v284_v38, %v219_v8 }
  0x14   : > { %248 = vperm.xlu1 %429, %v211_v2   ;;  %234 = vperm.xlu0 %427, %v211_v2  }
  0x18   : > { %430 = vset.pattern.permute.xlu1 %v463_v6  ;;  %431 = vset.pattern.permute.xlu0 %v463_v6 }
  0x19   : > { %262 = vperm.xlu1 %430, %v211_v2  }
  0x8a   : > { %v226_v10 = vpop.permute.xlu1 %225  ;;  %v216_v11 = vpop.permute.xlu0 %215 }
  0x8b   : > { %v221_v12 = vrot.slane %v216_v11, %v220_v9  ;;  %v231_v19 = vrot.slane %v226_v10, %v220_v9 }
  0x8d   : > { %v222_v16 = vmul.f32 %v221_v12, %v210_v13 }
  0x8f   : > { %v249_v14 = vpop.permute.xlu1 %248  ;;  %v235_v15 = vpop.permute.xlu0 %234  ;;  %v232_v22 = vadd.f32 %v231_v19, %v222_v16 }
  0x90   : > { %v254_v17 = vrot.slane %v249_v14, %v220_v9  ;;  %v240_v18 = vrot.slane %v235_v15, %v220_v9 }
  0x92   : > { %v255_v20 = vmul.f32 %v254_v17, %v210_v13  ;;  %v241_v21 = vmul.f32 %v240_v18, %v210_v13 }
  0x94   : > { %v391_v23 = vrot.slane %v241_v21, 9  ;;  %v263_v24 = vpop.permute.xlu1 %262  ;;  %v392_v26 = vrot.slane %v255_v20, 10 }
  0x95   : > { %v268_v25 = vrot.slane %v263_v24, %v220_v9 }
  0x96   : > { %v246_v27 = vadd.f32 %v391_v23, %v232_v22 }
  0x97   : > { %v269_v28 = vmul.f32 %v268_v25, %v210_v13 }
  0x98   : > { %v260_v29 = vadd.f32 %v392_v26, %v246_v27 }
  0x99   : > { %v393_v30 = vrot.slane %v269_v28, 11 }
  0x9b   : > { %v274_v31 = vadd.f32 %v393_v30, %v260_v29 }
  0x9d   : > { %v275_v32 = vsub.f32 0.0, %v274_v31 }
  0x9f   : > { %v276_v33 = vmul.f32 1.442695, %v275_v32 }
  0xa1   : > { %432 = vpow2.f32 %v276_v33 }
  0xae   : > { %v433_v34 = vpop.eup %432 }
  0xaf   : > { %v278_v35 = vadd.f32 1.0, %v433_v34 }
  0xb1   : > { %434 = vrcp.f32 %v278_v35 }
  0xbe   : > { %v435_v40 = vpop.eup %434 }
  0xbf   : > { %v288_v41 = vrot.slane %v435_v40, %v287_v39 }
  0xc1   : > { %v295_v42 = vrot.slane %v288_v41, %v287_v39 }
  0xc3   : > { %301 = vst.msk [vmem:[%s208_s26] sm:$0x3] %vm299_vm0, %v295_v42 }
  0xc4 PF: > { %s15_s16 = sadd.s32 1, %s458_s16   ;;  %s532_s14 = smov %s454_s15 }
  0xc5   : > { %p12_p5 = scmp.ge.s32.totalorder %s15_s16, 4   ;;  %s533_s15 = smov %s535_s2 }
  0xc7   :  { %14 = sbr.rel (!%p12_p5) target bundleno = 3 (0x3), region = 62 }

</bundles_post_ra>
